<compile_context>
chip_gen: v7x
topology: tpu7x:2x2x1
jax: 0.10.0
libtpu: 0.0.40
codegen_flags: <defaults>
</compile_context>

<pallas_src>
import functools

import numpy as np
import jax
import jax.numpy as jnp
from jax.experimental import pallas as pl
from jax.experimental.pallas import tpu as pltpu


def _pos_enc_kernel(enc_ref, table_ref, out_ref, *, num_layers, vocab):
    """One grid step processes TN flattened (batch*support) positions.

    enc_ref:   (2, TN)          raw spd distances, row 0 = src-dist, row 1 = tgt-dist
    table_ref: (D_pad, V_pad)   transposed, zero-padded embedding table
    out_ref:   (D_pad, TN)      embedding(src) + embedding(tgt), transposed
    """
    enc = enc_ref[...]                                              # (2, TN) f32
    # clamp: values > num_layers + 0.5 -> num_layers + 1 ("unreachable" bucket)
    clamped = jnp.where(enc > num_layers + 0.5,
                        jnp.float32(num_layers + 1), enc)
    idx = clamped.astype(jnp.int32)                                 # (2, TN)
    src = idx[0:1, :]                                               # (1, TN)
    tgt = idx[1:2, :]                                               # (1, TN)
    # NOTE: out-of-range / negative distances yield all-zero one-hot rows (silent),
    # unlike torch.nn.Embedding which would raise.

    table = table_ref[...]                                          # (D_pad, V_pad)
    d_pad, tn = out_ref.shape
    acc = jnp.zeros((d_pad, tn), jnp.float32)
    # Tiny-vocab embedding lookup as VPU one-hot multiply-adds (vocab = num_layers+2,
    # typically 4): acc[d, n] = table[d, src[n]] + table[d, tgt[n]].
    for v in range(vocab):
        oh = ((src == v).astype(jnp.float32)
              + (tgt == v).astype(jnp.float32))                     # (1, TN)
        acc = acc + table[:, v:v + 1] * oh                          # (D_pad, TN)
    out_ref[...] = acc


def _round_up(x, m):
    return ((x + m - 1) // m) * m


@functools.partial(jax.jit, static_argnums=(2,))
def position_encoder_forward(encodings, emb_table, num_layers):
    """JAX/Pallas equivalent of PositionEncoder.forward (enc='spd') device part.

    encodings: [B, S, 2] float (src-dist, tgt-dist) pairs gathered on CPU.
    emb_table: [num_layers+2, enc_dim] trainable embedding table.
    Returns (encodings_out [B, S, enc_dim], common_nodes scalar, walk_encodings=None).
    """
    B, S, two = encodings.shape
    assert two == 2
    V, D = emb_table.shape
    assert V == num_layers + 2

    encodings = encodings.astype(jnp.float32)
    emb_table = emb_table.astype(jnp.float32)

    # common_nodes: count over batch of [exactly 2 support rows with pair-sum > 0],
    # normalized by batch*support, exactly as the original module. Kept out of the
    # kernel (trivial reduction) so the grid axis stays "parallel" on multi-TC chips.
    row_nonzero = jnp.sum(encodings, axis=-1) > 0.0                 # (B, S)
    common_nodes = (jnp.sum(jnp.sum(row_nonzero, axis=-1) == 2)
                    .astype(jnp.float32) / float(B * S))

    N = B * S
    LANE, SUB = 128, 8
    TN = min(2048, _round_up(N, LANE))        # lane-dense tile of flattened rows
    N_pad = _round_up(N, TN)
    D_pad = _round_up(D, SUB)
    V_pad = _round_up(V, LANE)

    # Flatten + transpose so the long (batch*support) axis maps to lanes.
    enc_t = jnp.pad(jnp.transpose(encodings.reshape(N, 2)),
                    ((0, 0), (0, N_pad - N)))                       # (2, N_pad)
    table_t = jnp.pad(jnp.transpose(emb_table),
                      ((0, D_pad - D), (0, V_pad - V)))             # (D_pad, V_pad)

    kernel = functools.partial(_pos_enc_kernel, num_layers=num_layers, vocab=V)

    out_t = pl.pallas_call(
        kernel,
        out_shape=jax.ShapeDtypeStruct((D_pad, N_pad), jnp.float32),
        grid=(N_pad // TN,),
        in_specs=[
            pl.BlockSpec((2, TN), lambda i: (0, i)),
            pl.BlockSpec((D_pad, V_pad), lambda i: (0, 0)),   # VMEM-resident table
        ],
        out_specs=pl.BlockSpec((D_pad, TN), lambda i: (0, i)),
        compiler_params=pltpu.CompilerParams(
            dimension_semantics=("parallel",)),
    )(enc_t, table_t)

    # Slice off padding, transpose back to [B, S, D] (wrapper-side layout plumbing).
    out = jnp.transpose(out_t[:D, :N]).reshape(B, S, D)
    walk_encodings = None  # matches the original forward
    return out, common_nodes, walk_encodings


if __name__ == "__main__":
    # Small shapes consistent with the module: batch=2, k-hop support=16,
    # num_layers=2 (-> embedding vocab = num_layers+2 = 4), enc_dim=8.
    B, S = 2, 16
    NUM_LAYERS, ENC_DIM = 2, 8
    V = NUM_LAYERS + 2

    key = jax.random.PRNGKey(0)
    k_enc, k_tbl = jax.random.split(key)

    # Synthetic spd distance pairs in {0, ..., 2*num_layers} (2*n_hop = "unreached").
    enc_int = jax.random.randint(k_enc, (B, S, 2), 0, 2 * NUM_LAYERS + 1)
    encodings = enc_int.astype(jnp.float32)

    # Deterministic trainable embedding table (nn.Embedding(num_layers+2, enc_dim)).
    emb_table = jax.random.normal(k_tbl, (V, ENC_DIM), jnp.float32) * 0.1

    out, common_nodes, _ = position_encoder_forward(encodings, emb_table, NUM_LAYERS)
    out = jax.block_until_ready(out)
    common_nodes = jax.block_until_ready(common_nodes)

    # Pure-numpy reference of the PyTorch forward (post-lookup part).
    enc_np = np.asarray(encodings)
    tbl_np = np.asarray(emb_table)
    row_nz = enc_np.sum(-1) > 0                                    # (B, S)
    cn_ref = float((row_nz.sum(-1) == 2).sum()) / (B * S)
    clamped = np.where(enc_np > NUM_LAYERS + 0.5, NUM_LAYERS + 1, enc_np).astype(np.int64)
    out_ref = tbl_np[clamped].sum(-2)                              # (B, S, D)

    assert out.shape == (B, S, ENC_DIM), "shape mismatch"
    assert np.allclose(np.asarray(out), out_ref, atol=1e-5), "encoding mismatch"
    assert abs(float(common_nodes) - cn_ref) < 1e-6, "common_nodes mismatch"
    print("KERNEL_OK")
</pallas_src>

<mosaic_0001>
module attributes {stable_mosaic.version = 11 : i64} {
  func.func @_pos_enc_kernel(%arg0: i32, %arg1: memref<2x128xf32, #tpu.memory_space<vmem>>, %arg2: memref<8x128xf32, #tpu.memory_space<vmem>>, %arg3: memref<8x128xf32, #tpu.memory_space<vmem>>) attributes {dimension_semantics = [#tpu.dimension_semantics<parallel>], iteration_bounds = array<i64: 1>, scalar_prefetch = 0 : i64, scratch_operands = 0 : i64, tpu.core_type = #tpu.core_type<tc>, window_params = [{transform_indices = @transform_0, window_bounds = array<i64: 2, 128>}, {pipeline_mode = #tpu.pipeline_mode<synchronous>, transform_indices = @transform_1, window_bounds = array<i64: 8, 128>}, {transform_indices = @transform_2, window_bounds = array<i64: 8, 128>}]} {
    %c0 = arith.constant 0 : index
    %c0_0 = arith.constant 0 : index
    %0 = vector.load %arg1[%c0, %c0_0] : memref<2x128xf32, #tpu.memory_space<vmem>>, vector<2x128xf32>
    %cst = arith.constant 2.500000e+00 : f32
    %1 = vector.broadcast %cst : f32 to vector<2x128xf32>
    %2 = arith.cmpf ogt, %0, %1 : vector<2x128xf32>
    %cst_1 = arith.constant 3.000000e+00 : f32
    %3 = vector.broadcast %cst_1 : f32 to vector<2x128xf32>
    %4 = arith.select %2, %3, %0 : vector<2x128xi1>, vector<2x128xf32>
    %5 = arith.fptosi %4 : vector<2x128xf32> to vector<2x128xi32>
    %6 = vector.extract_strided_slice %5 {offsets = [0, 0], sizes = [1, 128], strides = [1, 1]} : vector<2x128xi32> to vector<1x128xi32>
    %7 = vector.extract_strided_slice %5 {offsets = [1, 0], sizes = [1, 128], strides = [1, 1]} : vector<2x128xi32> to vector<1x128xi32>
    %c0_2 = arith.constant 0 : index
    %c0_3 = arith.constant 0 : index
    %8 = vector.load %arg2[%c0_2, %c0_3] : memref<8x128xf32, #tpu.memory_space<vmem>>, vector<8x128xf32>
    %cst_4 = arith.constant 0.000000e+00 : f32
    %9 = vector.broadcast %cst_4 : f32 to vector<8x128xf32>
    %c0_i32 = arith.constant 0 : i32
    %10 = vector.broadcast %c0_i32 : i32 to vector<1x128xi32>
    %11 = arith.cmpi eq, %6, %10 : vector<1x128xi32>
    %12 = arith.extui %11 : vector<1x128xi1> to vector<1x128xi32>
    %13 = arith.sitofp %12 : vector<1x128xi32> to vector<1x128xf32>
    %c0_i32_5 = arith.constant 0 : i32
    %14 = vector.broadcast %c0_i32_5 : i32 to vector<1x128xi32>
    %15 = arith.cmpi eq, %7, %14 : vector<1x128xi32>
    %16 = arith.extui %15 : vector<1x128xi1> to vector<1x128xi32>
    %17 = arith.sitofp %16 : vector<1x128xi32> to vector<1x128xf32>
    %18 = arith.addf %13, %17 : vector<1x128xf32>
    %19 = vector.extract_strided_slice %8 {offsets = [0, 0], sizes = [8, 1], strides = [1, 1]} : vector<8x128xf32> to vector<8x1xf32>
    %20 = vector.broadcast %19 : vector<8x1xf32> to vector<8x128xf32>
    %21 = vector.broadcast %18 : vector<1x128xf32> to vector<8x128xf32>
    %22 = arith.mulf %20, %21 : vector<8x128xf32>
    %23 = arith.addf %9, %22 : vector<8x128xf32>
    %c1_i32 = arith.constant 1 : i32
    %24 = vector.broadcast %c1_i32 : i32 to vector<1x128xi32>
    %25 = arith.cmpi eq, %6, %24 : vector<1x128xi32>
    %26 = arith.extui %25 : vector<1x128xi1> to vector<1x128xi32>
    %27 = arith.sitofp %26 : vector<1x128xi32> to vector<1x128xf32>
    %c1_i32_6 = arith.constant 1 : i32
    %28 = vector.broadcast %c1_i32_6 : i32 to vector<1x128xi32>
    %29 = arith.cmpi eq, %7, %28 : vector<1x128xi32>
    %30 = arith.extui %29 : vector<1x128xi1> to vector<1x128xi32>
    %31 = arith.sitofp %30 : vector<1x128xi32> to vector<1x128xf32>
    %32 = arith.addf %27, %31 : vector<1x128xf32>
    %33 = vector.extract_strided_slice %8 {offsets = [0, 1], sizes = [8, 1], strides = [1, 1]} : vector<8x128xf32> to vector<8x1xf32>
    %34 = vector.broadcast %33 : vector<8x1xf32> to vector<8x128xf32>
    %35 = vector.broadcast %32 : vector<1x128xf32> to vector<8x128xf32>
    %36 = arith.mulf %34, %35 : vector<8x128xf32>
    %37 = arith.addf %23, %36 : vector<8x128xf32>
    %c2_i32 = arith.constant 2 : i32
    %38 = vector.broadcast %c2_i32 : i32 to vector<1x128xi32>
    %39 = arith.cmpi eq, %6, %38 : vector<1x128xi32>
    %40 = arith.extui %39 : vector<1x128xi1> to vector<1x128xi32>
    %41 = arith.sitofp %40 : vector<1x128xi32> to vector<1x128xf32>
    %c2_i32_7 = arith.constant 2 : i32
    %42 = vector.broadcast %c2_i32_7 : i32 to vector<1x128xi32>
    %43 = arith.cmpi eq, %7, %42 : vector<1x128xi32>
    %44 = arith.extui %43 : vector<1x128xi1> to vector<1x128xi32>
    %45 = arith.sitofp %44 : vector<1x128xi32> to vector<1x128xf32>
    %46 = arith.addf %41, %45 : vector<1x128xf32>
    %47 = vector.extract_strided_slice %8 {offsets = [0, 2], sizes = [8, 1], strides = [1, 1]} : vector<8x128xf32> to vector<8x1xf32>
    %48 = vector.broadcast %47 : vector<8x1xf32> to vector<8x128xf32>
    %49 = vector.broadcast %46 : vector<1x128xf32> to vector<8x128xf32>
    %50 = arith.mulf %48, %49 : vector<8x128xf32>
    %51 = arith.addf %37, %50 : vector<8x128xf32>
    %c3_i32 = arith.constant 3 : i32
    %52 = vector.broadcast %c3_i32 : i32 to vector<1x128xi32>
    %53 = arith.cmpi eq, %6, %52 : vector<1x128xi32>
    %54 = arith.extui %53 : vector<1x128xi1> to vector<1x128xi32>
    %55 = arith.sitofp %54 : vector<1x128xi32> to vector<1x128xf32>
    %c3_i32_8 = arith.constant 3 : i32
    %56 = vector.broadcast %c3_i32_8 : i32 to vector<1x128xi32>
    %57 = arith.cmpi eq, %7, %56 : vector<1x128xi32>
    %58 = arith.extui %57 : vector<1x128xi1> to vector<1x128xi32>
    %59 = arith.sitofp %58 : vector<1x128xi32> to vector<1x128xf32>
    %60 = arith.addf %55, %59 : vector<1x128xf32>
    %61 = vector.extract_strided_slice %8 {offsets = [0, 3], sizes = [8, 1], strides = [1, 1]} : vector<8x128xf32> to vector<8x1xf32>
    %62 = vector.broadcast %61 : vector<8x1xf32> to vector<8x128xf32>
    %63 = vector.broadcast %60 : vector<1x128xf32> to vector<8x128xf32>
    %64 = arith.mulf %62, %63 : vector<8x128xf32>
    %65 = arith.addf %51, %64 : vector<8x128xf32>
    %c0_9 = arith.constant 0 : index
    %c0_10 = arith.constant 0 : index
    %66 = vector.load %arg3[%c0_9, %c0_10] : memref<8x128xf32, #tpu.memory_space<vmem>>, vector<8x128xf32>
    tpu.vector_store %arg3[%c0_9, %c0_10], %65 {strides = array<i32>} : memref<8x128xf32, #tpu.memory_space<vmem>>, vector<8x128xf32>,
    return
  }
  func.func @transform_0(%arg0: i32) -> (i32, i32) {
    %c0_i32 = arith.constant 0 : i32
    %c0_i32_0 = arith.constant 0 : i32
    return %c0_i32, %arg0 : i32, i32
  }
  func.func @transform_1(%arg0: i32) -> (i32, i32) {
    %c0_i32 = arith.constant 0 : i32
    %c0_i32_0 = arith.constant 0 : i32
    %c0_i32_1 = arith.constant 0 : i32
    return %c0_i32, %c0_i32_0 : i32, i32
  }
  func.func @transform_2(%arg0: i32) -> (i32, i32) {
    %c0_i32 = arith.constant 0 : i32
    %c0_i32_0 = arith.constant 0 : i32
    return %c0_i32, %arg0 : i32, i32
  }
}

</mosaic_0001>

<bundles_post_ra>
// kernel: position_encoder_forward.1
= control target key start
LH: loop header
LB: loop body
LE: loop exit
PB: predicated region body
PF: predicated region fallthrough
CT: control target
= control target key end

     0   :  { %v106_v0 = vmov 0   ;;  %v107_v2 = vmov 2   ;;  %v108_v3 = vmov 1   ;;  %v109_v4 = vmov 3   ;;  %s135_s1 = inlined_call_operand.vmem [shape: f32[8,128], index: 1, kind: input, shape index: {}]   ;;  %s136_s0 = inlined_call_operand.vmem [shape: f32[2,128], index: 0, kind: input, shape index: {}]   ;;  %s137_s2 = inlined_call_operand.vmem [shape: f32[8,128], index: 2, kind: output, shape index: {}]  }
   0x1   :  { %101 = vset.pattern.permute.xlu0 %v106_v0  ;;  %v15_v1 = vld [vmem:[%s135_s1] sm:$0xff]  ;;  %103 = vset.pattern.permute.xlu1 %v107_v2  ;;  %v28_v9 = vlaneseq  ;;  %v110_v10 = vmov 0.0  }
   0x2   :  { %25 = vperm.xlu0 %101, %v15_v1   ;;  %59 = vperm.xlu1 %103, %v15_v1   ;;  %v11_v5 = vld [vmem:[%s136_s0] sm:$0x3] }
   0x3   :  { %vm12_vm0 = vcmp.gt.f32.partialorder %v11_v5, 2.5  ;;  %v29_v15 = vshrl.u32 %v28_v9, 7 }
   0x4   :  { %v13_v6 = vsel %vm12_vm0, 3.0, %v11_v5 }
   0x5   :  { %v94_v7 = vtrunc.f32 %v13_v6  ;;  %v30_v20 = vsub.s32 0, %v29_v15 }
   0x6   :  { %102 = vset.pattern.permute.xlu0 %v108_v3  ;;  %104 = vset.pattern.permute.xlu1 %v109_v4 }
   0x7   :  { %42 = vperm.xlu0 %102, %v15_v1   ;;  %76 = vperm.xlu1 %104, %v15_v1   ;;  %v95_v8 = vcvt.f32.s32 %v94_v7 }
   0x9   :  { %vm16_vm1 = vcmp.eq.s32.totalorder %v95_v8, 0  ;;  %vm34_vm2 = vcmp.eq.s32.totalorder %v95_v8, 1  ;;  %vm51_vm3 = vcmp.eq.s32.totalorder %v95_v8, 2  ;;  %vm68_vm4 = vcmp.eq.s32.totalorder %v95_v8, 3 }
   0xa   :  { %v90_v11 = vsel %vm16_vm1, 1.0, %v110_v10  ;;  %v91_v12 = vsel %vm34_vm2, 1.0, %v110_v10  ;;  %v92_v13 = vsel %vm51_vm3, 1.0, %v110_v10  ;;  %v93_v14 = vsel %vm68_vm4, 1.0, %v110_v10 }
   0xb   :  { %105 = vset.pattern.permute.xlu0 %v109_v4  ;;  %v20_v16 = vrot.slane %v90_v11, 1  ;;  %v38_v17 = vrot.slane %v91_v12, 1  ;;  %v55_v18 = vrot.slane %v92_v13, 1  ;;  %v72_v19 = vrot.slane %v93_v14, 1 }
   0xd   :  { %v22_v21 = vadd.f32 %v90_v11, %v20_v16  ;;  %v40_v22 = vadd.f32 %v91_v12, %v38_v17  ;;  %v57_v25 = vadd.f32 %v92_v13, %v55_v18  ;;  %v74_v26 = vadd.f32 %v93_v14, %v72_v19 }
   0xf   :  { %v31_v27 = vrot.slane %v22_v21, %v30_v20  ;;  %v48_v28 = vrot.slane %v40_v22, %v30_v20  ;;  %v65_v29 = vrot.slane %v57_v25, %v30_v20  ;;  %v82_v30 = vrot.slane %v74_v26, %v30_v20 }
  0x81   :  { %v26_v23 = vpop.permute.xlu0 %25  ;;  %v60_v24 = vpop.permute.xlu1 %59 }
  0x82   :  { %v32_v33 = vmul.f32 %v31_v27, %v26_v23  ;;  %v66_v35 = vmul.f32 %v65_v29, %v60_v24 }
  0x86   :  { %v43_v31 = vpop.permute.xlu0 %42  ;;  %v77_v32 = vpop.permute.xlu1 %76 }
  0x87   :  { %v49_v34 = vmul.f32 %v48_v28, %v43_v31  ;;  %v83_v37 = vmul.f32 %v82_v30, %v77_v32 }
  0x89   :  { %v50_v36 = vadd.f32 %v49_v34, %v32_v33 }
  0x8b   :  { %v67_v38 = vadd.f32 %v66_v35, %v50_v36 }
  0x8d   :  { %v84_v39 = vadd.f32 %v83_v37, %v67_v38 }
  0x8f   :  { %85 = vst [vmem:[%s137_s2] sm:$0xff] %v84_v39 }

</bundles_post_ra>
